<compile_context>
chip_gen: v7x
topology: tpu7x:2x2x1
jax: 0.10.0
libtpu: 0.0.40
codegen_flags: <defaults>
</compile_context>

<pallas_src>
import jax
import jax.numpy as jnp
from jax.experimental import pallas as pl
from jax.experimental.pallas import tpu as pltpu


def projection_head_kernel(x_ref, w1_ref, b1_ref, w2_ref, b2_ref, o_ref):
    # x_ref:  (C,  T)   channels-as-rows, T = spatial tile (lane dim)
    # w1_ref: (C,  C)   bf16 conv1 weight with BN(eval) scale folded in
    # b1_ref: (C,  1)   f32 folded bias/shift (scale*b1 + shift)
    # w2_ref: (Cp, C)   bf16 conv2 weight
    # b2_ref: (Cp, 1)   f32 conv2 bias
    # o_ref:  (Cp, T)
    x = x_ref[...].astype(jnp.bfloat16)        # MXU-native; no-op if x is bf16

    # Conv1x1 #1 (C -> C): bf16 operands, f32 accumulation; bias + ReLU in f32.
    h = jnp.dot(w1_ref[...], x, preferred_element_type=jnp.float32)
    h = jnp.maximum(h + b1_ref[...], 0.0)

    # Conv1x1 #2 (C -> Cp): bf16 operands, f32 accumulation.
    y = jnp.dot(w2_ref[...], h.astype(jnp.bfloat16),
                preferred_element_type=jnp.float32)
    y = y + b2_ref[...]

    # L2 normalize over channels (rows).  PyTorch: y / max(||y||_2, 1e-12)
    # => multiply by rsqrt(max(sum(y^2), 1e-24)); rsqrt goes to the EUP slot.
    sumsq = jnp.sum(y * y, axis=0, keepdims=True)            # (1, T)
    inv = jax.lax.rsqrt(jnp.maximum(sumsq, 1e-24))
    o_ref[...] = (y * inv).astype(o_ref.dtype)


def _pick_hw_tile(N, C, Cp, HW_pad, x_itemsize, out_itemsize, budget_bytes):
    """Largest lane-aligned spatial tile fitting the VMEM budget (>=2 grid steps)."""
    # Single-buffered constant blocks: bf16 weights + f32 biases (lane-padded to 128).
    weight_bytes = (C * C + Cp * C) * 2 + (C + Cp) * 128 * 4
    avail = max(budget_bytes - weight_bytes, 1 << 20)
    # Per lane-column cost of one grid step:
    #   x tile (double-buffered) + out tile (double-buffered)
    #   + f32 intermediates h, y + their bf16 copies (compiler VMEM scratch).
    per_col = (2 * C * x_itemsize + 2 * Cp * out_itemsize
               + (C + Cp) * 4 + (C + Cp) * 2)
    hw_tile = min(avail // per_col, HW_pad, 8192)
    hw_tile = max(128, (hw_tile // 128) * 128)
    # Megacore (v7x: 2 TCs share the "parallel" grid axes): keep >= 2 steps.
    while N * (-(-HW_pad // hw_tile)) < 2 and hw_tile > 128:
        hw_tile = max(128, (hw_tile // 2 // 128) * 128)
    return int(hw_tile)


def projection_head_forward(x_nchw, params, *, vmem_limit_bytes=48 * 1024 * 1024):
    """x_nchw: (N, C, H, W).  Returns (N, Cp, H, W) in x_nchw.dtype."""
    N, C, H, W = x_nchw.shape
    HW = H * W
    Cp = params["w2"].shape[0]
    eps = 1e-5

    # Fold BN (eval mode, running stats) + conv1 bias into the first matmul.
    scale = params["gamma"] / jnp.sqrt(params["run_var"] + eps)       # (C,)
    shift = params["beta"] - params["run_mean"] * scale               # (C,)
    W1 = params["w1"].reshape(C, C)                                   # (Cout, Cin)
    W2 = params["w2"].reshape(Cp, C)
    w1f = (scale[:, None] * W1).astype(jnp.bfloat16)                  # (C, C)  MXU-native
    b1f = (scale * params["b1"] + shift).astype(jnp.float32).reshape(C, 1)
    w2m = W2.astype(jnp.bfloat16)                                     # (Cp, C)
    b2 = params["b2"].astype(jnp.float32).reshape(Cp, 1)

    # Free view: channels-as-rows, spatial flattened onto the lane axis.
    # Pad once in HBM if HW is not lane-aligned (instead of a full-extent,
    # potentially VMEM-busting fallback block).
    x3 = x_nchw.reshape(N, C, HW)
    HW_pad = -(-HW // 128) * 128
    if HW_pad != HW:
        x3 = jnp.pad(x3, ((0, 0), (0, 0), (0, HW_pad - HW)))

    out_dtype = x_nchw.dtype
    out_itemsize = jnp.dtype(out_dtype).itemsize
    hw_tile = _pick_hw_tile(N, C, Cp, HW_pad, x3.dtype.itemsize, out_itemsize,
                            budget_bytes=vmem_limit_bytes - (8 << 20))
    grid = (N, -(-HW_pad // hw_tile))

    cost = pl.CostEstimate(
        flops=2 * N * HW_pad * (C * C + C * Cp),
        transcendentals=N * HW_pad,                      # one rsqrt per pixel
        bytes_accessed=(x3.size * x3.dtype.itemsize
                        + (C * C + Cp * C) * 2 + (C + Cp) * 4
                        + N * Cp * HW_pad * out_itemsize),
    )

    single_buf = pl.Buffered(buffer_count=1)             # constant weight blocks

    out3 = pl.pallas_call(
        projection_head_kernel,
        out_shape=jax.ShapeDtypeStruct((N, Cp, HW_pad), out_dtype),
        grid_spec=pltpu.PrefetchScalarGridSpec(
            num_scalar_prefetch=0,
            grid=grid,
            in_specs=[
                pl.BlockSpec((None, C, hw_tile), lambda n, j: (n, 0, j)),   # x tile
                pl.BlockSpec((C, C), lambda n, j: (0, 0),
                             pipeline_mode=single_buf),                     # W1 folded
                pl.BlockSpec((C, 1), lambda n, j: (0, 0),
                             pipeline_mode=single_buf),                     # b1 folded
                pl.BlockSpec((Cp, C), lambda n, j: (0, 0),
                             pipeline_mode=single_buf),                     # W2
                pl.BlockSpec((Cp, 1), lambda n, j: (0, 0),
                             pipeline_mode=single_buf),                     # b2
            ],
            out_specs=pl.BlockSpec((None, Cp, hw_tile), lambda n, j: (n, 0, j)),
        ),
        compiler_params=pltpu.CompilerParams(
            dimension_semantics=("parallel", "parallel"),
            vmem_limit_bytes=vmem_limit_bytes),
        cost_estimate=cost,
    )(x3, w1f, b1f, w2m, b2)

    return out3[:, :, :HW].reshape(N, Cp, H, W)


def _reference_forward(x_nchw, params):
    """Pure-JAX f32 reference (same eval-mode BN semantics) for validation."""
    eps = 1e-5
    N, C, H, W = x_nchw.shape
    Cp = params["w2"].shape[0]
    W1 = params["w1"].reshape(C, C)
    W2 = params["w2"].reshape(Cp, C)
    x = x_nchw.reshape(N, C, H * W)
    h = jnp.einsum("oc,ncl->nol", W1, x) + params["b1"][None, :, None]
    h = (h - params["run_mean"][None, :, None]) / jnp.sqrt(
        params["run_var"][None, :, None] + eps)
    h = h * params["gamma"][None, :, None] + params["beta"][None, :, None]
    h = jnp.maximum(h, 0.0)
    y = jnp.einsum("oc,ncl->nol", W2, h) + params["b2"][None, :, None]
    norm = jnp.sqrt(jnp.sum(y * y, axis=1, keepdims=True))
    y = y / jnp.maximum(norm, 1e-12)
    return y.reshape(N, Cp, H, W)


def make_params(key, dim_in, proj_dim):
    ks = jax.random.split(key, 8)
    return {
        "w1": jax.random.normal(ks[0], (dim_in, dim_in, 1, 1), jnp.float32) * 0.1,
        "b1": jax.random.normal(ks[1], (dim_in,), jnp.float32) * 0.1,
        "gamma": 1.0 + 0.1 * jax.random.normal(ks[2], (dim_in,), jnp.float32),
        "beta": 0.1 * jax.random.normal(ks[3], (dim_in,), jnp.float32),
        "run_mean": 0.05 * jax.random.normal(ks[4], (dim_in,), jnp.float32),
        "run_var": jnp.abs(1.0 + 0.1 * jax.random.normal(ks[5], (dim_in,), jnp.float32)),
        "w2": jax.random.normal(ks[6], (proj_dim, dim_in, 1, 1), jnp.float32) * 0.1,
        "b2": jax.random.normal(ks[7], (proj_dim,), jnp.float32) * 0.1,
    }


if __name__ == "__main__":
    key = jax.random.PRNGKey(0)
    N, dim_in, H, W = 2, 32, 16, 16
    proj_dim = 64

    k_x, k_p = jax.random.split(key)
    x = jax.random.normal(k_x, (N, dim_in, H, W), jnp.float32)
    params = make_params(k_p, dim_in, proj_dim)

    out = projection_head_forward(x, params)
    out = jax.block_until_ready(out)

    ref = _reference_forward(x, params)
    assert out.shape == (N, proj_dim, H, W)
    # bf16 MXU operands with f32 accumulation: validate at a bf16-appropriate tol.
    assert jnp.allclose(out, ref, atol=2e-2, rtol=2e-2), "mismatch vs reference"

    print("KERNEL_OK")
</pallas_src>

<mosaic_0001>
module attributes {stable_mosaic.version = 11 : i64} {
  func.func @projection_head_kernel(%arg0: i32, %arg1: i32, %arg2: memref<1x32x256xf32, #tpu.memory_space<vmem>>, %arg3: memref<32x32xbf16, #tpu.memory_space<vmem>>, %arg4: memref<32x1xf32, #tpu.memory_space<vmem>>, %arg5: memref<64x32xbf16, #tpu.memory_space<vmem>>, %arg6: memref<64x1xf32, #tpu.memory_space<vmem>>, %arg7: memref<1x64x256xf32, #tpu.memory_space<vmem>>) attributes {dimension_semantics = [#tpu.dimension_semantics<parallel>, #tpu.dimension_semantics<parallel>], iteration_bounds = array<i64: 2, 1>, scalar_prefetch = 0 : i64, scratch_operands = 0 : i64, tpu.core_type = #tpu.core_type<tc>, window_params = [{transform_indices = @transform_0, window_bounds = array<i64: 1, 32, 256>}, {pipeline_mode = #tpu.pipeline_mode<synchronous>, transform_indices = @transform_1, window_bounds = array<i64: 32, 32>}, {pipeline_mode = #tpu.pipeline_mode<synchronous>, transform_indices = @transform_2, window_bounds = array<i64: 32, 1>}, {pipeline_mode = #tpu.pipeline_mode<synchronous>, transform_indices = @transform_3, window_bounds = array<i64: 64, 32>}, {pipeline_mode = #tpu.pipeline_mode<synchronous>, transform_indices = @transform_4, window_bounds = array<i64: 64, 1>}, {transform_indices = @transform_5, window_bounds = array<i64: 1, 64, 256>}]} {
    %c0 = arith.constant 0 : index
    %c0_0 = arith.constant 0 : index
    %c0_1 = arith.constant 0 : index
    %0 = vector.load %arg2[%c0, %c0_0, %c0_1] : memref<1x32x256xf32, #tpu.memory_space<vmem>>, vector<1x32x256xf32>
    %1 = vector.shape_cast %0 : vector<1x32x256xf32> to vector<32x256xf32>
    %2 = arith.truncf %1 : vector<32x256xf32> to vector<32x256xbf16>
    %c0_2 = arith.constant 0 : index
    %c0_3 = arith.constant 0 : index
    %3 = vector.load %arg3[%c0_2, %c0_3] : memref<32x32xbf16, #tpu.memory_space<vmem>>, vector<32x32xbf16>
    %cst = arith.constant dense<0.000000e+00> : vector<32x256xf32>
    %4 = tpu.matmul %3, %2, %cst {dimension_numbers = #tpu.dot_dimension_numbers<[1], [0], [0], [1], [0, 0, 1, 1], [], []>} : vector<32x32xbf16>, vector<32x256xbf16>, vector<32x256xf32> -> vector<32x256xf32>
    %c0_4 = arith.constant 0 : index
    %c0_5 = arith.constant 0 : index
    %5 = vector.load %arg4[%c0_4, %c0_5] : memref<32x1xf32, #tpu.memory_space<vmem>>, vector<32x1xf32>
    %6 = vector.broadcast %5 : vector<32x1xf32> to vector<32x256xf32>
    %7 = arith.addf %4, %6 : vector<32x256xf32>
    %cst_6 = arith.constant 0.000000e+00 : f32
    %8 = vector.broadcast %cst_6 : f32 to vector<32x256xf32>
    %9 = arith.maximumf %7, %8 : vector<32x256xf32>
    %c0_7 = arith.constant 0 : index
    %c0_8 = arith.constant 0 : index
    %10 = vector.load %arg5[%c0_7, %c0_8] : memref<64x32xbf16, #tpu.memory_space<vmem>>, vector<64x32xbf16>
    %11 = arith.truncf %9 : vector<32x256xf32> to vector<32x256xbf16>
    %cst_9 = arith.constant dense<0.000000e+00> : vector<64x256xf32>
    %12 = tpu.matmul %10, %11, %cst_9 {dimension_numbers = #tpu.dot_dimension_numbers<[1], [0], [0], [1], [0, 0, 1, 1], [], []>} : vector<64x32xbf16>, vector<32x256xbf16>, vector<64x256xf32> -> vector<64x256xf32>
    %c0_10 = arith.constant 0 : index
    %c0_11 = arith.constant 0 : index
    %13 = vector.load %arg6[%c0_10, %c0_11] : memref<64x1xf32, #tpu.memory_space<vmem>>, vector<64x1xf32>
    %14 = vector.broadcast %13 : vector<64x1xf32> to vector<64x256xf32>
    %15 = arith.addf %12, %14 : vector<64x256xf32>
    %16 = arith.mulf %15, %15 : vector<64x256xf32>
    %cst_12 = arith.constant dense<0.000000e+00> : vector<256xf32>
    %17 = vector.multi_reduction <add>, %16, %cst_12 [0] : vector<64x256xf32> to vector<256xf32>
    %18 = vector.shape_cast %17 : vector<256xf32> to vector<1x256xf32>
    %cst_13 = arith.constant 1.000000e-24 : f32
    %19 = vector.broadcast %cst_13 : f32 to vector<1x256xf32>
    %20 = arith.maximumf %18, %19 : vector<1x256xf32>
    %21 = math.rsqrt %20 : vector<1x256xf32>
    %22 = vector.broadcast %21 : vector<1x256xf32> to vector<64x256xf32>
    %23 = arith.mulf %15, %22 : vector<64x256xf32>
    %c0_14 = arith.constant 0 : index
    %c0_15 = arith.constant 0 : index
    %c0_16 = arith.constant 0 : index
    %24 = vector.load %arg7[%c0_14, %c0_15, %c0_16] : memref<1x64x256xf32, #tpu.memory_space<vmem>>, vector<1x64x256xf32>
    %25 = vector.shape_cast %24 : vector<1x64x256xf32> to vector<64x256xf32>
    %26 = vector.shape_cast %23 : vector<64x256xf32> to vector<1x64x256xf32>
    tpu.vector_store %arg7[%c0_14, %c0_15, %c0_16], %26 {strides = array<i32>} : memref<1x64x256xf32, #tpu.memory_space<vmem>>, vector<1x64x256xf32>,
    return
  }
  func.func @transform_0(%arg0: i32, %arg1: i32) -> (i32, i32, i32) {
    %c0_i32 = arith.constant 0 : i32
    %c0_i32_0 = arith.constant 0 : i32
    return %arg0, %c0_i32, %arg1 : i32, i32, i32
  }
  func.func @transform_1(%arg0: i32, %arg1: i32) -> (i32, i32) {
    %c0_i32 = arith.constant 0 : i32
    %c0_i32_0 = arith.constant 0 : i32
    %c0_i32_1 = arith.constant 0 : i32
    return %c0_i32, %c0_i32_0 : i32, i32
  }
  func.func @transform_2(%arg0: i32, %arg1: i32) -> (i32, i32) {
    %c0_i32 = arith.constant 0 : i32
    %c0_i32_0 = arith.constant 0 : i32
    %c0_i32_1 = arith.constant 0 : i32
    return %c0_i32, %c0_i32_0 : i32, i32
  }
  func.func @transform_3(%arg0: i32, %arg1: i32) -> (i32, i32) {
    %c0_i32 = arith.constant 0 : i32
    %c0_i32_0 = arith.constant 0 : i32
    %c0_i32_1 = arith.constant 0 : i32
    return %c0_i32, %c0_i32_0 : i32, i32
  }
  func.func @transform_4(%arg0: i32, %arg1: i32) -> (i32, i32) {
    %c0_i32 = arith.constant 0 : i32
    %c0_i32_0 = arith.constant 0 : i32
    %c0_i32_1 = arith.constant 0 : i32
    return %c0_i32, %c0_i32_0 : i32, i32
  }
  func.func @transform_5(%arg0: i32, %arg1: i32) -> (i32, i32, i32) {
    %c0_i32 = arith.constant 0 : i32
    %c0_i32_0 = arith.constant 0 : i32
    return %arg0, %c0_i32, %arg1 : i32, i32, i32
  }
}

</mosaic_0001>

<bundles_post_ra>
// kernel: tpu_custom_call.1
= control target key start
LH: loop header
LB: loop body
LE: loop exit
PB: predicated region body
PF: predicated region fallthrough
CT: control target
= control target key end

     0   :  { %10 = vsyncpa [#allocation3], 0  ;;  %s1301_s0 = inlined_call_operand.vmem [shape: f32[2,32,256], index: 0, kind: input, shape index: {}]   ;;  %s1302_s1 = inlined_call_operand.hbm [shape: bf16[32,32], index: 1, kind: input, shape index: {}]   ;;  %s1303_s2 = inlined_call_operand.vmem [shape: f32[32,1], index: 2, kind: input, shape index: {}]   ;;  %s1304_s3 = inlined_call_operand.vmem [shape: bf16[64,32], index: 3, kind: input, shape index: {}]   ;;  %s1305_s4 = inlined_call_operand.vmem [shape: f32[64,1], index: 4, kind: input, shape index: {}]   ;;  %s1306_s5 = inlined_call_operand.hbm [shape: f32[2,64,256], index: 5, kind: output, shape index: {}]  }
   0x1   :  { %11 = vsyncpa [#allocation4], 0 }
   0x2   :  { %13 = vsyncpa [#allocation4 + $0x1], 0  ;;  %s1003_s18 = smov 0   ;;  %s1005_s19 = smov 0  }
   0x3   :  { %s1007_s20 = smov 0   ;;  %s1009_s21 = smov 0  }
   0x4   :  { %s1011_s22 = smov 0   ;;  %s1013_s23 = smov 0  }
   0x5 LB: > { %s738_s24 = sadd.s32 4294967295, %s964_s23   ;;  %s739_s25 = sadd.s32 4294967294, %s964_s23   ;;  %s964_s23 = sphi %s1013_s23, %s19_s23   ;;  %s960_s22 = sphi %s1011_s22, %s1324_s22   ;;  %s956_s21 = sphi %s1009_s21, %s1323_s21   ;;  %s952_s20 = sphi %s1007_s20, %s1322_s20   ;;  %s948_s19 = sphi %s1005_s19, %s1321_s19   ;;  %s944_s18 = sphi %s1003_s18, %s1320_s18  }
   0x6   : > { %s31_s26 = sadd.s32 1, %s960_s22  ;;  %s152_s27 = sadd.s32 1, %s952_s20 }
   0x7   : > { %p33_p0 = scmp.ge.s32.totalorder %s31_s26, 2  ;;  %p162_p1 = scmp.ne.s32.totalorder %s952_s20, %s948_s19 }
   0x8   : > { %p163_p2 = scmp.eq.s32.totalorder %s738_s24, 1  ;;  %p168_p3 = scmp.ne.s32.totalorder %s948_s19, %s944_s18 }
   0x9   : > { %s1326_s26 = smov (%p33_p0, %s31_s26), 0  ;;  %p169_p5 = scmp.eq.s32.totalorder %s739_s25, 1 }
   0xa   : > { %p1043_p4 = por %p163_p2, %p162_p1  ;;  %s147_s29 = ssub.s32 %s960_s22, %s1326_s26 }
   0xb   : > { %p740_p6 = scmp.ge.s32.totalorder %s964_s23, 1  ;;  %p150_p7 = scmp.eq.s32.totalorder %s147_s29, 0 }
   0xc   : > { %s1311_s28 = scalar_select %p1043_p4, 1, 0 }
   0xd   : > { %p1050_p8 = por %p169_p5, %p168_p3  ;;  %p176_p9 = scmp.lt.s32.totalorder %s964_s23, 3 }
   0xe   : > { %s1056_s6 = scalar_select %p150_p7, %s952_s20, %s152_s27  }
   0xf   : > { %s1312_s30 = scalar_select %p1050_p8, 1, 0 }
  0x10   : > { %p1058_p10 = pnand %p740_p6, %p176_p9  ;;  %p1062_p11 = scmp.eq.s32.totalorder %s738_s24, 0 }
  0x11   : > { %s966_s9 = smov [#allocation2]   ;;  %s854_s14 = scalar_lea.hbm %s1302_s1, 256 }
  0x12   : > { %s1313_s7 = scalar_select %p1058_p10, 1, 0 }
  0x13   : > { %s1314_s8 = scalar_select %p1062_p11, 1, 0 }
  0x14   : > { %p777_p12 = pneg %p1058_p10  ;;  %s188_s10 = sshll.u32 %s966_s9, 4  ;;  %s189_s10 = int_to_ptr.vmem [resolvable:$true] %s188_s10 }
  0x15   : > { %p855_p0 = scmp.ne.s32.totalorder %s1302_s1, %s854_s14  ;;  %p861_p5 = scmp.lt.u32.totalorder %s854_s14, %s1302_s1 }
  0x16   : > { %p1070_p13 = pnand %p1062_p11, %p777_p12 }
  0x18   : > { %p856_p1 = pneg %p1070_p13 }
  0x1a   : > { %p857_p2 = pnand %p856_p1, %p855_p0 }
  0x1c   : > { %p858_p3 = pneg %p857_p2 }
  0x1e   : > { %p863_p6 = pnand %p861_p5, %p858_p3 }
  0x20   : > { %866 = shalt.err (!%p863_p6)
}
  0x21   : > { %s867_s25 = scalar_lea.vmem %s189_s10, 256  ;;  %p875_p8 = scmp.lt.s32.totalorder %s189_s10, %s189_s10 }
  0x22   : > { %p868_p7 = scmp.ne.s32.totalorder %s189_s10, %s867_s25  ;;  %p876_p4 = scmp.lt.s32.totalorder %s867_s25, %s867_s25 }
  0x24   : > { %p870_p9 = pnand %p868_p7, %p856_p1  ;;  %p877_p11 = por %p876_p4, %p875_p8 }
  0x26   : > { %p871_p12 = pneg %p870_p9 }
  0x28   : > { %p878_p10 = pnand %p877_p11, %p871_p12 }
  0x2a   : > { %881 = shalt.err (!%p878_p10)
}
  0x2b   : > { %s967_s27 = smov 64   ;;  %s968_s29 = smov 4  }
  0x2c   : > { %780 = dma.hbm_to_vmem [thread:$0]  (!%p1070_p13), %s1302_s1, 256, %s189_s10, [#allocation3], %s967_s27, %s967_s27, %s968_s29  }
  0x2d   : > { %p1316_p0 = scmp.ne.s32.totalorder %s1313_s7, 0 }
  0x2e   : > { %p1317_p2 = scmp.ne.s32.totalorder (!%p1316_p0), %s1314_s8, 0 }
  0x2f   : > { %226 = sbr.rel (%p1316_p0) target bundleno = 591 (0x24f), region = 40 }
  0x36   : > { %935 = dma.done.wait (%p1317_p2), [#allocation3], 256  }
  0x37   : > { %937 = vsyncadd (%p1317_p2), [#allocation3], 4294967040  ;;  %p259_p4 = scmp.lt.s32.totalorder %s956_s21, 1  ;;  %v969_v0 = vmov 0   ;;  %v286_v13 = vld [vmem:[%s1303_s2] sm:$0xff]  ;;  %v288_v14 = vld [vmem:[%s1303_s2 + $0x10] sm:$0xff] }
  0x38   : > { %359 = vmatprep.mubr.bf16.mxu0 %v969_v0  ;;  %842 = vset.pattern.permute.xlu0 %v969_v0  ;;  %v287_v15 = vld [vmem:[%s1303_s2 + $0x8] sm:$0xff]  ;;  %v844_v16 = vld [vmem:[#allocation2] sm:$0xff]   ;;  %v289_v17 = vld [vmem:[%s1303_s2 + $0x18] sm:$0xff]  ;;  %vm320_vm0 = vcmask 261120   ;;  %s255_s16 = sand.u32 1, %s948_s19   ;;  %s766_s24 = sshll.u32 %s956_s21, 11 }
  0x39   : > { %s260_s11 = scalar_select %p259_p4, %s956_s21, 1  ;;  %843 = vset.pattern.permute.xlu1 %v969_v0  ;;  %522 = vmatprep.mubr.bf16.mxu1 %v969_v0  ;;  %v400_v18 = vld [vmem:[%s1305_s4] sm:$0xff]  ;;  %v401_v19 = vld [vmem:[%s1305_s4 + $0x8] sm:$0xff]  ;;  %v402_v20 = vld [vmem:[%s1305_s4 + $0x10] sm:$0xff] }
  0x3a   : > { %292 = vperm.xlu0 %842, %v286_v13   ;;  %302 = vperm.xlu1 %843, %v288_v14   ;;  %v845_v21 = vld [vmem:[#allocation2 + $0x8] sm:$0xff]   ;;  %v403_v22 = vld [vmem:[%s1305_s4 + $0x18] sm:$0xff]  ;;  %v404_v23 = vld [vmem:[%s1305_s4 + $0x20] sm:$0xff]  ;;  %s745_s17 = sshll.u32 %s255_s16, 7  ;;  %s1235_s9 = scalar_lea.hbm %s1306_s5, %s766_s24 }
  0x3b   : > { %s765_s7 = sshll.u32 %s260_s11, 6  ;;  %v405_v24 = vld [vmem:[%s1305_s4 + $0x28] sm:$0xff]  ;;  %v406_v25 = vld [vmem:[%s1305_s4 + $0x30] sm:$0xff]  ;;  %v407_v26 = vld [vmem:[%s1305_s4 + $0x38] sm:$0xff]  ;;  %s1215_s25 = scalar_lea.vmem [#allocation5], %s745_s17 }
  0x3c   : > { %s266_s14 = scalar_lea.vmem %s1301_s0, %s765_s7  ;;  %v846_v59 = vld [vmem:[%s1304_s3] sm:$0xff]   ;;  %v847_v60 = vld [vmem:[%s1304_s3 + $0x8] sm:$0xff]   ;;  %v848_v61 = vld [vmem:[%s1304_s3 + $0x10] sm:$0xff]   ;;  %s647_s27 = sshll.u32 %s1215_s25, 4  ;;  %s1237_s27 = int_to_ptr.vmem [resolvable:$true] %s647_s27 }
  0x3d   : > { %v271_v1 = vld [vmem:[%s266_s14 + $0x8] sm:$0xff]  ;;  %v273_v2 = vld [vmem:[%s266_s14 + $0x18] sm:$0xff]  ;;  %v270_v3 = vld [vmem:[%s266_s14] sm:$0xff]  ;;  %s1255_s12 = scalar_lea.sflag [#allocation4], %s255_s16  ;;  %s882_s11 = scalar_lea.vmem %s1237_s27, 2048 }
  0x3e   : > { %v279_v4 = vpack.c.bf16 %v273_v2, %v271_v1  ;;  %v272_v5 = vld [vmem:[%s266_s14 + $0x10] sm:$0xff]  ;;  %v275_v6 = vld [vmem:[%s266_s14 + $0x28] sm:$0xff]  ;;  %v277_v7 = vld [vmem:[%s266_s14 + $0x38] sm:$0xff]  ;;  %297 = vperm.xlu0 %842, %v287_v15   ;;  %307 = vperm.xlu1 %843, %v289_v17   ;;  %p883_p8 = scmp.ne.s32.totalorder %s1237_s27, %s882_s11  ;;  %p1318_p10 = scmp.ne.s32.totalorder %s1311_s28, 0 }
  0x3f   : > { %v278_v8 = vpack.c.bf16 %v272_v5, %v270_v3  ;;  %v281_v9 = vpack.c.bf16 %v277_v7, %v275_v6  ;;  %v274_v10 = vld [vmem:[%s266_s14 + $0x20] sm:$0xff]  ;;  %v276_v11 = vld [vmem:[%s266_s14 + $0x30] sm:$0xff]  ;;  %v849_v62 = vld [vmem:[%s1304_s3 + $0x18] sm:$0xff]   ;;  %s970_s7 = smov [#allocation5]  }
  0x40   : > { %327 = vmatprep.subr.bf16.mxu0 %v279_v4  ;;  %v280_v12 = vpack.c.bf16 %v276_v11, %v274_v10  ;;  %p884_p11 = pnand %p883_p8, %p1318_p10  ;;  %s886_s10 = sshll.u32 %s970_s7, 4  ;;  %s887_s10 = int_to_ptr.vmem [resolvable:$false] %s886_s10 }
  0x41   : > { %328 = vmatpush1.bf16.msra.mxu0 %v278_v8  ;;  %s888_s13 = scalar_lea.vmem %s887_s10, 4096  ;;  %p889_p1 = scmp.lt.s32.totalorder %s1237_s27, %s887_s10 }
  0x42   : > { %329 = vmatprep.subr.bf16.mxu0 %v281_v9  ;;  %410 = vperm.xlu0 %842, %v400_v18   ;;  %p885_p13 = pneg %p884_p11  ;;  %p890_p3 = scmp.lt.s32.totalorder %s888_s13, %s882_s11 }
  0x43   : > { %415 = vperm.xlu1 %843, %v401_v19  }
  0x44   : > { %p891_p5 = por %p890_p3, %p889_p1 }
  0x45   : > { %330 = vmatpush1.bf16.msra.mxu0 %v280_v12 }
  0x46   : > { %420 = vperm.xlu0 %842, %v402_v20   ;;  %p892_p6 = pnand %p891_p5, %p885_p13 }
  0x47   : > { %425 = vperm.xlu1 %843, %v403_v22  }
  0x48   : > { %750 = vmatmul.mubr.msk.bf16.vlgmr.msra.gmra.mrb[0].mxu0 %vm320_vm0, %v844_v16 }
  0x49   : > { %369 = vmatprep.mubr.bf16.mxu0 %v969_v0 }
  0x4a   : > { %430 = vperm.xlu0 %842, %v404_v23  }
  0x4b   : > { %435 = vperm.xlu1 %843, %v405_v24  }
  0x4e   : > { %440 = vperm.xlu0 %842, %v406_v25  }
  0x4f   : > { %445 = vperm.xlu1 %843, %v407_v26  }
  0x50   : > { %751 = vmatmul.mubr.msk.bf16.gmra.mrb[4].mxu0 %vm320_vm0, %v845_v21 }
  0x51   : > { %512 = vmatprep.mubr.bf16.mxu0 %v969_v0 }
  0xb9   : > { %v293_v27 = vpop.permute.xlu0 %292  ;;  %v303_v36 = vpop.permute.xlu1 %302 }
  0xbd   : > { %v298_v31 = vpop.permute.xlu0 %297  ;;  %v308_v47 = vpop.permute.xlu1 %307 }
  0xc1   : > { %v411_v63 = vpop.permute.xlu0 %410 }
  0xc2   : > { %v416_v1 = vpop.permute.xlu1 %415 }
  0xc5   : > { %v421_v2 = vpop.permute.xlu0 %420 }
  0xc6   : > { %v426_v14 = vpop.permute.xlu1 %425 }
  0xc9   : > { %v431_v25 = vpop.permute.xlu0 %430 }
 0x11b   : > { %v361_v28 = vpop.f32.mrb[0].mxu0 }
 0x11c   : > { %v362_v29 = vadd.f32 %v361_v28, %v293_v27  ;;  %v363_v30 = vpop.f32.mrb[1].mxu0 }
 0x11d   : > { %v364_v32 = vadd.f32 %v363_v30, %v293_v27  ;;  %v365_v33 = vpop.f32.mrb[2].mxu0 }
 0x11e   : > { %v366_v34 = vadd.f32 %v365_v33, %v298_v31  ;;  %v367_v35 = vpop.f32.mrb[3].mxu0  ;;  %v380_v38 = vmax.f32 %v362_v29, 0.0  ;;  %v436_v33 = vpop.permute.xlu1 %435 }
 0x11f   : > { %v368_v37 = vadd.f32 %v367_v35, %v298_v31  ;;  %v381_v40 = vmax.f32 %v364_v32, 0.0 }
 0x120   : > { %v382_v39 = vmax.f32 %v366_v34, 0.0 }
 0x121   : > { %v383_v41 = vmax.f32 %v368_v37, 0.0 }
 0x122   : > { %v396_v42 = vpack.c.bf16 %v382_v39, %v380_v38 }
 0x123   : > { %v397_v43 = vpack.c.bf16 %v383_v41, %v381_v40  ;;  %v371_v44 = vpop.f32.mrb[4].mxu0 }
 0x124   : > { %v372_v45 = vadd.f32 %v371_v44, %v303_v36  ;;  %v373_v46 = vpop.f32.mrb[5].mxu0 }
 0x125   : > { %v374_v48 = vadd.f32 %v373_v46, %v303_v36  ;;  %v375_v49 = vpop.f32.mrb[6].mxu0  ;;  %480 = vmatprep.subr.bf16.mxu0 %v397_v43  ;;  %767 = vmatprep.subr.bf16.mxu1 %v397_v43 }
 0x126   : > { %v376_v50 = vadd.f32 %v375_v49, %v308_v47  ;;  %v377_v51 = vpop.f32.mrb[7].mxu0  ;;  %481 = vmatpush1.bf16.msra.mxu0 %v396_v42  ;;  %769 = vmatpush1.bf16.msra.mxu1 %v396_v42  ;;  %v384_v53 = vmax.f32 %v372_v45, 0.0 }
 0x127   : > { %v378_v52 = vadd.f32 %v377_v51, %v308_v47  ;;  %v385_v55 = vmax.f32 %v374_v48, 0.0 }
 0x128   : > { %v386_v54 = vmax.f32 %v376_v50, 0.0  ;;  %v441_v50 = vpop.permute.xlu0 %440 }
 0x129   : > { %v387_v56 = vmax.f32 %v378_v52, 0.0 }
 0x12a   : > { %v398_v57 = vpack.c.bf16 %v386_v54, %v384_v53 }
 0x12b   : > { %v399_v58 = vpack.c.bf16 %v387_v56, %v385_v55  ;;  %v446_v55 = vpop.permute.xlu1 %445 }
 0x12d   : > { %482 = vmatprep.subr.bf16.mxu0 %v399_v58  ;;  %768 = vmatprep.subr.bf16.mxu1 %v399_v58 }
 0x12e   : > { %483 = vmatpush1.bf16.msra.mxu0 %v398_v57  ;;  %770 = vmatpush1.bf16.msra.mxu1 %v398_v57 }
 0x131   : > { %756 = vmatmul.mubr.msk.bf16.vlgmr.msra.gmra.mrb[8].mxu0 %vm320_vm0, %v846_v59  ;;  %757 = vmatmul.mubr.msk.bf16.vlgmr.msra.gmra.mrb[0].mxu1 %vm320_vm0, %v847_v60 }
 0x132   : > { %532 = vmatprep.mubr.bf16.mxu1 %v969_v0 }
 0x139   : > { %758 = vmatmul.mubr.msk.bf16.gmra.mrb[4].mxu1 %vm320_vm0, %v848_v61 }
 0x13a   : > { %542 = vmatprep.mubr.bf16.mxu1 %v969_v0 }
 0x141   : > { %759 = vmatmul.mubr.msk.bf16.gmra.mrb[8].mxu1 %vm320_vm0, %v849_v62 }
 0x204   : > { %v514_v3 = vpop.f32.mrb[8].mxu0  ;;  %v524_v4 = vpop.f32.mrb[0].mxu1 }
 0x205   : > { %v1163_v5 = vadd.f32 %v514_v3, %v411_v63  ;;  %v516_v6 = vpop.f32.mrb[9].mxu0  ;;  %v526_v7 = vpop.f32.mrb[1].mxu1  ;;  %v1167_v0 = vadd.f32 %v524_v4, %v421_v2 }
 0x206   : > { %v1165_v8 = vadd.f32 %v516_v6, %v411_v63  ;;  %v518_v9 = vpop.f32.mrb[10].mxu0  ;;  %v528_v10 = vpop.f32.mrb[2].mxu1  ;;  %v1171_v15 = vadd.f32 %v526_v7, %v421_v2 }
 0x207   : > { %v1169_v11 = vadd.f32 %v518_v9, %v416_v1  ;;  %v520_v12 = vpop.f32.mrb[11].mxu0  ;;  %v530_v13 = vpop.f32.mrb[3].mxu1  ;;  %v553_v17 = vmul.f32 %v1163_v5, %v1163_v5  ;;  %v1179_v19 = vadd.f32 %v528_v10, %v426_v14  ;;  %v557_v23 = vmul.f32 %v1167_v0, %v1167_v0 }
 0x208   : > { %v1173_v16 = vadd.f32 %v520_v12, %v416_v1  ;;  %v554_v20 = vmul.f32 %v1165_v8, %v1165_v8  ;;  %v1185_v22 = vadd.f32 %v530_v13, %v426_v14  ;;  %v558_v26 = vmul.f32 %v1171_v15, %v1171_v15 }
 0x209   : > { %v555_v18 = vmul.f32 %v1169_v11, %v1169_v11  ;;  %v559_v29 = vmul.f32 %v1179_v19, %v1179_v19 }
 0x20a   : > { %v556_v21 = vmul.f32 %v1173_v16, %v1173_v16  ;;  %v560_v34 = vmul.f32 %v1185_v22, %v1185_v22 }
 0x20b   : > { %v569_v24 = vadd.f32 %v555_v18, %v553_v17 }
 0x20c   : > { %v582_v27 = vadd.f32 %v556_v21, %v554_v20  ;;  %v534_v28 = vpop.f32.mrb[4].mxu1 }
 0x20d   : > { %v570_v30 = vadd.f32 %v569_v24, %v557_v23  ;;  %v1193_v31 = vadd.f32 %v534_v28, %v431_v25  ;;  %v536_v32 = vpop.f32.mrb[5].mxu1 }
 0x20e   : > { %v583_v35 = vadd.f32 %v582_v27, %v558_v26  ;;  %v1197_v36 = vadd.f32 %v536_v32, %v431_v25  ;;  %v538_v37 = vpop.f32.mrb[6].mxu1 }
 0x20f   : > { %v571_v38 = vadd.f32 %v570_v30, %v559_v29  ;;  %v561_v39 = vmul.f32 %v1193_v31, %v1193_v31  ;;  %v1201_v40 = vadd.f32 %v538_v37, %v436_v33  ;;  %v540_v41 = vpop.f32.mrb[7].mxu1 }
 0x210   : > { %v584_v42 = vadd.f32 %v583_v35, %v560_v34  ;;  %v562_v43 = vmul.f32 %v1197_v36, %v1197_v36  ;;  %v1205_v44 = vadd.f32 %v540_v41, %v436_v33 }
 0x211   : > { %v572_v45 = vadd.f32 %v571_v38, %v561_v39  ;;  %v563_v46 = vmul.f32 %v1201_v40, %v1201_v40 }
 0x212   : > { %v585_v47 = vadd.f32 %v584_v42, %v562_v43  ;;  %v564_v48 = vmul.f32 %v1205_v44, %v1205_v44 }
 0x213   : > { %v573_v49 = vadd.f32 %v572_v45, %v563_v46 }
 0x214   : > { %v586_v51 = vadd.f32 %v585_v47, %v564_v48  ;;  %v544_v52 = vpop.f32.mrb[8].mxu1 }
 0x215   : > { %v545_v53 = vadd.f32 %v544_v52, %v441_v50  ;;  %v546_v54 = vpop.f32.mrb[9].mxu1 }
 0x216   : > { %v547_v56 = vadd.f32 %v546_v54, %v441_v50  ;;  %v548_v57 = vpop.f32.mrb[10].mxu1 }
 0x217   : > { %v565_v58 = vmul.f32 %v545_v53, %v545_v53  ;;  %v549_v59 = vadd.f32 %v548_v57, %v446_v55  ;;  %v550_v60 = vpop.f32.mrb[11].mxu1 }
 0x218   : > { %v566_v61 = vmul.f32 %v547_v56, %v547_v56  ;;  %v551_v62 = vadd.f32 %v550_v60, %v446_v55 }
 0x219   : > { %v574_v63 = vadd.f32 %v573_v49, %v565_v58  ;;  %v567_v1 = vmul.f32 %v549_v59, %v549_v59 }
 0x21a   : > { %v587_v2 = vadd.f32 %v586_v51, %v566_v61  ;;  %v568_v3 = vmul.f32 %v551_v62, %v551_v62 }
 0x21b   : > { %v575_v4 = vadd.f32 %v574_v63, %v567_v1 }
 0x21c   : > { %v588_v6 = vadd.f32 %v587_v2, %v568_v3 }
 0x21d   : > { %v576_v7 = vrot.slane %v575_v4, 4 }
 0x21e   : > { %v589_v9 = vrot.slane %v588_v6, 4 }
 0x21f   : > { %v577_v10 = vadd.f32 %v576_v7, %v575_v4 }
 0x220   : > { %v590_v12 = vadd.f32 %v589_v9, %v588_v6 }
 0x221   : > { %v578_v13 = vrot.slane %v577_v10, 2 }
 0x222   : > { %v591_v14 = vrot.slane %v590_v12, 2 }
 0x223   : > { %v579_v17 = vadd.f32 %v578_v13, %v577_v10 }
 0x224   : > { %v592_v18 = vadd.f32 %v591_v14, %v590_v12 }
 0x225   : > { %v580_v20 = vrot.slane %v579_v17, 1 }
 0x226   : > { %v593_v21 = vrot.slane %v592_v18, 1 }
 0x227   : > { %v581_v23 = vadd.f32 %v580_v20, %v579_v17 }
 0x228   : > { %v594_v24 = vadd.f32 %v593_v21, %v592_v18 }
 0x229   : > { %v595_v25 = vmax.f32 %v581_v23, 1e-24 }
 0x22a   : > { %v596_v26 = vmax.f32 %v594_v24, 1e-24 }
 0x22b   : > { %850 = vrsqrt.f32 %v595_v25 }
 0x22c   : > { %852 = vrsqrt.f32 %v596_v26 }
 0x235   : > { %v851_v27 = vpop.eup %850 }
 0x236   : > { %v853_v28 = vpop.eup %852  ;;  %v613_v29 = vmul.f32 %v851_v27, %v549_v59  ;;  %v599_v30 = vmul.f32 %v851_v27, %v1163_v5  ;;  %v601_v32 = vmul.f32 %v851_v27, %v1169_v11  ;;  %v603_v33 = vmul.f32 %v851_v27, %v1167_v0 }
 0x237   : > { %v614_v34 = vmul.f32 %v853_v28, %v551_v62  ;;  %v600_v35 = vmul.f32 %v853_v28, %v1165_v8  ;;  %v602_v37 = vmul.f32 %v853_v28, %v1173_v16  ;;  %v604_v38 = vmul.f32 %v853_v28, %v1171_v15 }
 0x238   : > { %629 = vst [vmem:[%s1215_s25 + $0x70] sm:$0xff] %v613_v29  ;;  %v605_v39 = vmul.f32 %v851_v27, %v1179_v19  ;;  %v606_v5 = vmul.f32 %v853_v28, %v1185_v22  ;;  %v607_v11 = vmul.f32 %v851_v27, %v1193_v31  ;;  %v608_v0 = vmul.f32 %v853_v28, %v1197_v36 }
 0x239   : > { %615 = vst [vmem:[%s1215_s25] sm:$0xff] %v599_v30  ;;  %617 = vst [vmem:[%s1215_s25 + $0x10] sm:$0xff] %v601_v32  ;;  %v609_v8 = vmul.f32 %v851_v27, %v1201_v40  ;;  %v610_v15 = vmul.f32 %v853_v28, %v1205_v44  ;;  %v611_v16 = vmul.f32 %v851_v27, %v545_v53 }
 0x23a   : > { %619 = vst [vmem:[%s1215_s25 + $0x20] sm:$0xff] %v603_v33  ;;  %630 = vst [vmem:[%s1215_s25 + $0x78] sm:$0xff] %v614_v34  ;;  %v612_v19 = vmul.f32 %v853_v28, %v547_v56 }
 0x23b   : > { %616 = vst [vmem:[%s1215_s25 + $0x8] sm:$0xff] %v600_v35  ;;  %618 = vst [vmem:[%s1215_s25 + $0x18] sm:$0xff] %v602_v37 }
 0x23c   : > { %620 = vst [vmem:[%s1215_s25 + $0x28] sm:$0xff] %v604_v38  ;;  %621 = vst [vmem:[%s1215_s25 + $0x30] sm:$0xff] %v605_v39 }
 0x23d   : > { %622 = vst [vmem:[%s1215_s25 + $0x38] sm:$0xff] %v606_v5  ;;  %623 = vst [vmem:[%s1215_s25 + $0x40] sm:$0xff] %v607_v11 }
 0x23e   : > { %624 = vst [vmem:[%s1215_s25 + $0x48] sm:$0xff] %v608_v0  ;;  %625 = vst [vmem:[%s1215_s25 + $0x50] sm:$0xff] %v609_v8 }
 0x23f   : > { %626 = vst [vmem:[%s1215_s25 + $0x58] sm:$0xff] %v610_v15  ;;  %627 = vst [vmem:[%s1215_s25 + $0x60] sm:$0xff] %v611_v16 }
 0x240   : > { %628 = vst [vmem:[%s1215_s25 + $0x68] sm:$0xff] %v612_v19 }
 0x241   : > { %895 = shalt.err (!%p892_p6)
}
 0x242   : > { %s896_s14 = scalar_lea.hbm %s1235_s9, 2048  ;;  %s900_s16 = scalar_lea.hbm %s1306_s5, 4096 }
 0x243   : > { %p897_p7 = scmp.ne.s32.totalorder %s1235_s9, %s896_s14  ;;  %p901_p0 = scmp.lt.u32.totalorder %s1235_s9, %s1306_s5 }
 0x244   : > { %p902_p2 = scmp.lt.u32.totalorder %s900_s16, %s896_s14  ;;  %p904_p8 = scmp.lt.u32.totalorder %s896_s14, %s1235_s9 }
 0x245   : > { %p898_p9 = pnand %p897_p7, %p1318_p10 }
 0x246   : > { %p903_p4 = por %p902_p2, %p901_p0 }
 0x247   : > { %p899_p12 = pneg %p898_p9 }
 0x248   : > { %p905_p11 = por %p904_p8, %p903_p4 }
 0x24a   : > { %p906_p13 = pnand %p905_p11, %p899_p12 }
 0x24c   : > { %909 = shalt.err (!%p906_p13)
}
 0x24d   : > { %s971_s25 = smov 256   ;;  %s972_s21 = smov 16  }
 0x24e   : > { %775 = dma.vmem_to_hbm [thread:$0]  (%p1318_p10), %s1237_s27, 2048, %s1235_s9, %s1255_s12, %s971_s25, %s971_s25, %s972_s21  }
 0x24f PF: > { %p787_p1 = scmp.ge.s32.totalorder %s964_s23, 2  ;;  %s662_s29 = sand.u32 1, %s944_s18  }
 0x250   : > { %p1319_p3 = scmp.ne.s32.totalorder %s1312_s30, 0  ;;  %s663_s11 = scalar_lea.sflag [#allocation4], %s662_s29 }
 0x252   : > { %p782_p5 = pnand %p787_p1, %p1319_p3 }
 0x254   : > { %939 = dma.done.wait (!%p782_p5), %s663_s11, 2048  }
 0x255   : > { %941 = vsyncadd (!%p782_p5), %s663_s11, 4294965248  ;;  %s19_s23 = sadd.s32 1, %s964_s23   ;;  %s1320_s18 = smov %s948_s19 }
 0x256   : > { %p16_p6 = scmp.ge.s32.totalorder %s19_s23, 4   ;;  %s1321_s19 = smov %s952_s20 }
 0x257   : > { %s1322_s20 = smov %s1056_s6  ;;  %s1323_s21 = smov %s960_s22 }
 0x258   : > { %s1324_s22 = smov %s1326_s26  ;;  %18 = sbr.rel (!%p16_p6) target bundleno = 5 (0x5), region = 80 }
 0x25f   :  { %668 = vsyncpa [#allocation3], 1 }
 0x260   :  { %670 = vsyncpa [#allocation3 + $0x1], 1 }
 0x261   :  { %671 = vsyncpa [#allocation4], 1 }
 0x262   :  { %673 = vsyncpa [#allocation4 + $0x1], 1 }

</bundles_post_ra>
